<compile_context>
chip_gen: v5e
topology: v5e:2x2
jax: 0.10.0
libtpu: 0.0.40
codegen_flags: <defaults>
</compile_context>

<pallas_src>
import functools
import math

import jax
import jax.numpy as jnp
from jax import lax
from jax.experimental import pallas as pl
from jax.experimental.pallas import tpu as pltpu


_BLOCK_ROWS = 8192      # rows per grid block  (8192 x 128 x 4B = 4 MiB f32 / input)
_SUB_ROWS = 1024        # rows per in-kernel accumulation sub-chunk (512 KiB f32)


def _cdiv(a, b):
    return -(-a // b)


def _round_up(a, b):
    return _cdiv(a, b) * b


def _choose_tiling(rows, block_rows, sub_rows):
    """Pick (tb, n_par, n_red); the padded row count is tb * n_par * n_red."""
    if rows <= block_rows:
        # Single block: keep it sub-chunk aligned when big, sublane aligned when tiny.
        tb = _round_up(rows, sub_rows if rows > sub_rows else 8)
        return tb, 1, 1
    n_blocks = _cdiv(rows, block_rows)
    # Always an even parallel-chunk count (>= 2) so v7x's two TensorCores
    # split the stream; larger counts only when block padding stays a small
    # fraction of the total work.
    if n_blocks >= 64:
        n_par = 8
    elif n_blocks >= 16:
        n_par = 4
    else:
        n_par = 2
    return block_rows, n_par, _cdiv(n_blocks, n_par)


def _sse_kernel(x_ref, y_ref, o_ref, *, sub_rows):
    """Accumulate sum-of-squared-diffs of one (tb, 128) tile into the resident
    (1, 8, 128) vreg-shaped output block."""
    j = pl.program_id(1)                       # inner reduction axis

    @pl.when(j == 0)
    def _():
        o_ref[...] = jnp.zeros_like(o_ref)

    tb = x_ref.shape[0]

    def accum(xs, ys):
        # Cast each operand to f32 *before* subtracting (bf16/f16 accuracy;
        # free on v5e which has no bf16 VPU path anyway).
        d = xs.astype(jnp.float32) - ys.astype(jnp.float32)
        d2 = d * d                             # pure VPU
        r = d2.shape[0]
        # (r, 128) -> (r//8, 8, 128) sublane-group fold; the axis-0 sum is
        # plain vreg adds (no XLU), result is a single vreg.
        o_ref[...] += jnp.sum(d2.reshape(r // 8, 8, 128), axis=0).reshape(1, 8, 128)

    if tb <= sub_rows:
        accum(x_ref[...], y_ref[...])
    else:
        n_sub = tb // sub_rows                 # static

        def body(c, carry):
            r0 = pl.multiple_of(c * sub_rows, sub_rows)
            accum(x_ref[pl.ds(r0, sub_rows), :], y_ref[pl.ds(r0, sub_rows), :])
            return carry

        lax.fori_loop(0, n_sub, body, 0)


def vec_loss(x, y, *, block_rows=_BLOCK_ROWS, sub_rows=_SUB_ROWS):
    """sum((x - y)**2) over all elements == torch.sum((x - y).pow(2).sum(1))."""
    assert x.shape == y.shape, "x and y must have identical shapes"
    assert sub_rows % 8 == 0 and block_rows % sub_rows == 0

    total = math.prod(x.shape)
    if total == 0:
        return jnp.float32(0.0)

    rows = _cdiv(total, 128)
    tb, n_par, n_red = _choose_tiling(rows, block_rows, sub_rows)
    padded_rows = tb * n_par * n_red
    padded_total = padded_rows * 128

    xf = x.reshape(-1)
    yf = y.reshape(-1)
    pad = padded_total - total
    if pad:
        # Zero padding is exact for the SSE and keeps every shape (ragged,
        # prime row counts, ...) on the same big-block streaming path.
        xf = jnp.pad(xf, (0, pad))
        yf = jnp.pad(yf, (0, pad))
    x2 = xf.reshape(padded_rows, 128)
    y2 = yf.reshape(padded_rows, 128)

    in_spec = pl.BlockSpec((tb, 128), lambda i, j: (i * n_red + j, 0))
    out_spec = pl.BlockSpec((1, 8, 128), lambda i, j: (i, 0, 0))

    # Dtype-aware scoped-VMEM budget: double-buffered input blocks + f32
    # sub-chunk temporaries + slack; clamp to [32 MiB, 48 MiB] so we override
    # v5e's 16 MiB default but keep headroom under v7x's 64 MiB physical VMEM.
    block_in_bytes = tb * 128 * (jnp.dtype(x.dtype).itemsize +
                                 jnp.dtype(y.dtype).itemsize)
    need = 2 * block_in_bytes + 4 * min(tb, sub_rows) * 128 * 4 + (2 << 20)
    vmem_limit = int(min(48 << 20, max(32 << 20, need)))

    partials = pl.pallas_call(
        functools.partial(_sse_kernel, sub_rows=sub_rows),
        out_shape=jax.ShapeDtypeStruct((n_par, 8, 128), jnp.float32),
        grid_spec=pltpu.PrefetchScalarGridSpec(
            num_scalar_prefetch=0,
            grid=(n_par, n_red),
            in_specs=[in_spec, in_spec],
            out_specs=out_spec,
        ),
        compiler_params=pltpu.CompilerParams(
            dimension_semantics=("parallel", "arbitrary"),
            vmem_limit_bytes=vmem_limit,
        ),
    )(x2, y2)

    # Tiny lane-dense partial-sum slab -> scalar (negligible final reduction).
    return jnp.sum(partials)


if __name__ == "__main__":
    key = jax.random.PRNGKey(0)
    ks = jax.random.split(key, 10)

    def ref_loss(a, b):
        af = a.astype(jnp.float32)
        bf = b.astype(jnp.float32)
        return jnp.sum(jnp.sum((af - bf) ** 2, axis=1))

    # 1) Small shape consistent with the module (batch=8, vec dim=256):
    #    single-block path, grid (1, 1), no padding needed.
    x = jax.random.normal(ks[0], (8, 256), dtype=jnp.float32)
    y = jax.random.normal(ks[1], (8, 256), dtype=jnp.float32)
    out = jax.block_until_ready(vec_loss(x, y))
    assert jnp.allclose(out, ref_loss(x, y), rtol=1e-4, atol=1e-3), out

    # 2) Multi-chunk pipelined path with the sub-chunked inner loop: small
    #    test-only tile overrides give grid (2, 2) with zero-padded rows.
    x2 = jax.random.normal(ks[2], (96, 640), dtype=jnp.float32)
    y2 = jax.random.normal(ks[3], (96, 640), dtype=jnp.float32)
    out2 = jax.block_until_ready(vec_loss(x2, y2, block_rows=128, sub_rows=64))
    assert jnp.allclose(out2, ref_loss(x2, y2), rtol=1e-4, atol=1e-2), out2

    # 3) Default tiling: rows = 2 * 8192 exactly -> grid (2, 1), 8 inner
    #    sub-chunk iterations per block, no padding.
    x3 = jax.random.normal(ks[4], (1024, 2048), dtype=jnp.float32)
    y3 = jax.random.normal(ks[5], (1024, 2048), dtype=jnp.float32)
    out3 = jax.block_until_ready(vec_loss(x3, y3))
    assert jnp.allclose(out3, ref_loss(x3, y3), rtol=1e-3, atol=1e-1), out3

    # 4) bf16 inputs (cast-before-subtract accuracy path).
    xb = jax.random.normal(ks[6], (8, 256), dtype=jnp.float32).astype(jnp.bfloat16)
    yb = jax.random.normal(ks[7], (8, 256), dtype=jnp.float32).astype(jnp.bfloat16)
    outb = jax.block_until_ready(vec_loss(xb, yb))
    assert jnp.allclose(outb, ref_loss(xb, yb), rtol=1e-3, atol=1e-2), outb

    # 5) Ragged shape -> zero-padded onto the same tiled path (no fallback).
    x4 = jax.random.normal(ks[8], (5, 37), dtype=jnp.float32)
    y4 = jax.random.normal(ks[9], (5, 37), dtype=jnp.float32)
    out4 = jax.block_until_ready(vec_loss(x4, y4))
    assert jnp.allclose(out4, ref_loss(x4, y4), rtol=1e-4, atol=1e-3), out4

    print("KERNEL_OK")
</pallas_src>

<mosaic_0001>
module attributes {stable_mosaic.version = 11 : i64} {
  func.func @_sse_kernel(%arg0: i32, %arg1: i32, %arg2: memref<16x128xf32, #tpu.memory_space<vmem>>, %arg3: memref<16x128xf32, #tpu.memory_space<vmem>>, %arg4: memref<1x8x128xf32, #tpu.memory_space<vmem>>) attributes {dimension_semantics = [#tpu.dimension_semantics<parallel>, #tpu.dimension_semantics<arbitrary>], iteration_bounds = array<i64: 1, 1>, scalar_prefetch = 0 : i64, scratch_operands = 0 : i64, tpu.core_type = #tpu.core_type<tc>, window_params = [{transform_indices = @transform_0, window_bounds = array<i64: 16, 128>}, {transform_indices = @transform_1, window_bounds = array<i64: 16, 128>}, {transform_indices = @transform_2, window_bounds = array<i64: 1, 8, 128>}]} {
    %c0_i32 = arith.constant 0 : i32
    %0 = arith.cmpi eq, %arg1, %c0_i32 : i32
    %1 = arith.extui %0 : i1 to i32
    %c0_i32_0 = arith.constant 0 : i32
    %2 = arith.cmpi ne, %1, %c0_i32_0 : i32
    scf.if %2 {
      %cst_10 = arith.constant 0.000000e+00 : f32
      %13 = vector.broadcast %cst_10 : f32 to vector<1x8x128xf32>
      %c0_11 = arith.constant 0 : index
      %c0_12 = arith.constant 0 : index
      %c0_13 = arith.constant 0 : index
      %14 = vector.load %arg4[%c0_11, %c0_12, %c0_13] : memref<1x8x128xf32, #tpu.memory_space<vmem>>, vector<1x8x128xf32>
      tpu.vector_store %arg4[%c0_11, %c0_12, %c0_13], %13 {strides = array<i32>} : memref<1x8x128xf32, #tpu.memory_space<vmem>>, vector<1x8x128xf32>,
    } else {
    }
    %c0 = arith.constant 0 : index
    %c0_1 = arith.constant 0 : index
    %3 = vector.load %arg2[%c0, %c0_1] : memref<16x128xf32, #tpu.memory_space<vmem>>, vector<16x128xf32>
    %c0_2 = arith.constant 0 : index
    %c0_3 = arith.constant 0 : index
    %4 = vector.load %arg3[%c0_2, %c0_3] : memref<16x128xf32, #tpu.memory_space<vmem>>, vector<16x128xf32>
    %5 = arith.subf %3, %4 : vector<16x128xf32>
    %6 = arith.mulf %5, %5 : vector<16x128xf32>
    %c0_4 = arith.constant 0 : index
    %c0_5 = arith.constant 0 : index
    %c0_6 = arith.constant 0 : index
    %7 = vector.load %arg4[%c0_4, %c0_5, %c0_6] : memref<1x8x128xf32, #tpu.memory_space<vmem>>, vector<1x8x128xf32>
    %8 = vector.shape_cast %6 : vector<16x128xf32> to vector<2x8x128xf32>
    %cst = arith.constant dense<0.000000e+00> : vector<8x128xf32>
    %9 = vector.multi_reduction <add>, %8, %cst [0] : vector<2x8x128xf32> to vector<8x128xf32>
    %10 = vector.shape_cast %9 : vector<8x128xf32> to vector<1x8x128xf32>
    %11 = arith.addf %7, %10 : vector<1x8x128xf32>
    %c0_7 = arith.constant 0 : index
    %c0_8 = arith.constant 0 : index
    %c0_9 = arith.constant 0 : index
    %12 = vector.load %arg4[%c0_7, %c0_8, %c0_9] : memref<1x8x128xf32, #tpu.memory_space<vmem>>, vector<1x8x128xf32>
    tpu.vector_store %arg4[%c0_7, %c0_8, %c0_9], %11 {strides = array<i32>} : memref<1x8x128xf32, #tpu.memory_space<vmem>>, vector<1x8x128xf32>,
    return
  }
  func.func @transform_0(%arg0: i32, %arg1: i32) -> (i32, i32) {
    %c1_i32 = arith.constant 1 : i32
    %0 = arith.muli %arg0, %c1_i32 : i32
    %1 = arith.addi %0, %arg1 : i32
    %c0_i32 = arith.constant 0 : i32
    %c0_i32_0 = arith.constant 0 : i32
    return %1, %c0_i32 : i32, i32
  }
  func.func @transform_1(%arg0: i32, %arg1: i32) -> (i32, i32) {
    %c1_i32 = arith.constant 1 : i32
    %0 = arith.muli %arg0, %c1_i32 : i32
    %1 = arith.addi %0, %arg1 : i32
    %c0_i32 = arith.constant 0 : i32
    %c0_i32_0 = arith.constant 0 : i32
    return %1, %c0_i32 : i32, i32
  }
  func.func @transform_2(%arg0: i32, %arg1: i32) -> (i32, i32, i32) {
    %c0_i32 = arith.constant 0 : i32
    %c0_i32_0 = arith.constant 0 : i32
    %c0_i32_1 = arith.constant 0 : i32
    return %arg0, %c0_i32, %c0_i32_0 : i32, i32, i32
  }
}

</mosaic_0001>

<bundles_post_ra>
// kernel: tpu_custom_call.1
= control target key start
LH: loop header
LB: loop body
LE: loop exit
PB: predicated region body
PF: predicated region fallthrough
CT: control target
= control target key end

     0   :  { %7 = vsyncpa [#allocation3], 0  ;;  %s204_s0 = inlined_call_operand.hbm [shape: f32[16,128], index: 0, kind: input, shape index: {}]   ;;  %s205_s1 = inlined_call_operand.hbm [shape: f32[16,128], index: 1, kind: input, shape index: {}]   ;;  %s206_s2 = inlined_call_operand.hbm [shape: f32[1,8,128], index: 2, kind: output, shape index: {}]  }
   0x1   :  { %8 = vsyncpa [#allocation6], 0 }
   0x2   :  { %9 = vsyncpa [#allocation4], 0  ;;  %s18_s11 = sshll.u32 %s204_s0, 4  ;;  %s175_s12 = smov [#allocation2]   ;;  %s19_s11 = int_to_ptr.hbm [resolvable:$true] %s18_s11 }
   0x3   :  { %s20_s13 = sshll.u32 %s175_s12, 4  ;;  %s35_s16 = sshll.u32 %s205_s1, 4  ;;  %s21_s13 = int_to_ptr.vmem [resolvable:$true] %s20_s13  ;;  %s36_s16 = int_to_ptr.hbm [resolvable:$true] %s35_s16 }
   0x4   :  { %s176_s17 = smov 128   ;;  %s177_s18 = smov 8  }
   0x5   :  { %26 = dma.hbm_to_vmem [thread:$0]  %s19_s11, 256, %s21_s13, [#allocation3], %s176_s17, %s176_s17, %s177_s18  }
   0x6   :  { %s178_s19 = smov [#allocation5]  }
   0x7   :  { %s37_s20 = sshll.u32 %s178_s19, 4  ;;  %s38_s20 = int_to_ptr.vmem [resolvable:$true] %s37_s20 }
   0x8   :  { %43 = dma.hbm_to_vmem [thread:$0]  %s36_s16, 256, %s38_s20, [#allocation6], %s176_s17, %s176_s17, %s177_s18  }
   0x9   :  { %169 = dma.done.wait [#allocation3], 256  }
   0xa   :  { %170 = vsyncadd [#allocation3], 4294967040 }
   0xb   :  { %171 = dma.done.wait [#allocation6], 256  }
   0xc   :  { %172 = vsyncadd [#allocation6], 4294967040  ;;  %v61_v0 = vld [vmem:[#allocation2] sm:$0xff]  ;;  %v62_v1 = vld [vmem:[#allocation2 + $0x8] sm:$0xff]  ;;  %s179_s0 = smov [#allocation7]   ;;  %s80_s23 = sshll.u32 %s206_s2, 4  ;;  %s81_s23 = int_to_ptr.hbm [resolvable:$true] %s80_s23 }
   0xd   :  { %v63_v2 = vld [vmem:[#allocation5] sm:$0xff]  ;;  %v64_v3 = vld [vmem:[#allocation5 + $0x8] sm:$0xff]  ;;  %s78_s1 = sshll.u32 %s179_s0, 4  ;;  %s79_s1 = int_to_ptr.vmem [resolvable:$true] %s78_s1 }
   0xe   :  { %v65_v4 = vsub.f32 %v61_v0, %v63_v2  ;;  %v66_v5 = vsub.f32 %v62_v1, %v64_v3 }
  0x10   :  { %v67_v6 = vmul.f32 %v65_v4, %v65_v4  ;;  %v68_v7 = vmul.f32 %v66_v5, %v66_v5 }
  0x12   :  { %v70_v8 = vadd.f32 %v68_v7, %v67_v6 }
  0x14   :  { %72 = vst [vmem:[#allocation7] sm:$0xff] %v70_v8 }
  0x15   :  { %83 = dma.vmem_to_hbm [thread:$0]  %s79_s1, 128, %s81_s23, [#allocation4]  }
  0x16   :  { %173 = dma.done.wait [#allocation4], 128  }
  0x17   :  { %174 = vsyncadd [#allocation4], 4294967168 }
  0x18   :  { %88 = vsyncpa [#allocation3], 1 }
  0x19   :  { %89 = vsyncpa [#allocation6], 1 }
  0x1a   :  { %90 = vsyncpa [#allocation4], 1 }

</bundles_post_ra>
